<compile_context>
chip_gen: v5e
topology: v5e:2x2
jax: 0.10.0
libtpu: 0.0.40
codegen_flags: <defaults>
</compile_context>

<pallas_src>
import functools

import jax
import jax.numpy as jnp
from jax.experimental import pallas as pl
from jax.experimental.pallas import tpu as pltpu


def _siamese_kernel(x_ref, wih_ref, whh_ref, b_ref, out_ref, *, B, T, H):
    """Fused Siamese LSTM forward.

    x_ref:   (T*2B, D) f32  time-major, both sequences fused along batch;
                             row t*2B + n is timestep t of fused-batch row n
                             (n < B -> x1, n >= B -> x2).
    wih_ref: (D, 4H)   f32  transposed torch weight_ih_l0
    whh_ref: (H, 4H)   f32  transposed torch weight_hh_l0
    b_ref:   (1, 4H)   f32  bias_ih + bias_hh
    out_ref: (B, 128)  f32  euclidean distance, broadcast across lanes
    """
    twoB = 2 * B
    w_hh_t = whh_ref[...]

    # Hoisted input projection: one MXU matmul over all timesteps and both
    # sequences, with the bias folded in.  Removes T tiny matmuls from the
    # serial recurrent dependency chain.
    gx = (jnp.dot(x_ref[...], wih_ref[...],
                  preferred_element_type=jnp.float32)
          + b_ref[...])                                      # (T*2B, 4H)

    h = jnp.zeros((twoB, H), jnp.float32)
    c = jnp.zeros((twoB, H), jnp.float32)

    # Static trip count (T=8) -> fully unrolled; per step only the recurrent
    # matmul + gate nonlinearities on a lane-dense (2B, 4H) tile.
    for t in range(T):
        gates = gx[t * twoB:(t + 1) * twoB, :] + jnp.dot(
            h, w_hh_t, preferred_element_type=jnp.float32)    # (2B, 4H)
        # PyTorch LSTM gate ordering: i, f, g, o
        i = jax.nn.sigmoid(gates[:, 0 * H:1 * H])
        f = jax.nn.sigmoid(gates[:, 1 * H:2 * H])
        g = jnp.tanh(gates[:, 2 * H:3 * H])
        o = jax.nn.sigmoid(gates[:, 3 * H:4 * H])
        c = f * c + i * g
        h = o * jnp.tanh(c)

    e1 = h[:B, :]                                            # (B, H)
    e2 = h[B:, :]                                            # (B, H)

    # torch.nn.functional.normalize(p=2, dim=1): v / max(||v||_2, eps)
    # implemented as v * rsqrt(max(sum(v^2), eps^2))  (single EUP op / row).
    eps = 1e-12
    s1 = jnp.sum(e1 * e1, axis=1, keepdims=True)
    s2 = jnp.sum(e2 * e2, axis=1, keepdims=True)
    e1 = e1 * jax.lax.rsqrt(jnp.maximum(s1, eps * eps))
    e2 = e2 * jax.lax.rsqrt(jnp.maximum(s2, eps * eps))

    # torch.norm(embed1 - embed2, p=2, dim=1)
    d = e1 - e2
    dist = jnp.sqrt(jnp.sum(d * d, axis=1, keepdims=True))   # (B, 1)

    # Lane-dense (unmasked) store: broadcast the distance across 128 lanes.
    out_ref[...] = jnp.broadcast_to(dist, (B, 128))


def siamese_forward(x1, x2, w_ih, w_hh, b_ih, b_hh):
    """x1, x2: (B, T, D).  Returns euclidean distances of shape (B,)."""
    B, T, D = x1.shape
    H4 = w_ih.shape[0]
    H = H4 // 4
    twoB = 2 * B

    # Fuse the two sequences along batch (shared encoder weights), then go
    # time-major and flatten so the kernel's hoisted input projection is a
    # single row-dense matmul.  Row t*2B + n = timestep t of fused row n.
    x_all = jnp.concatenate([x1, x2], axis=0).astype(jnp.float32)   # (2B,T,D)
    x_tm = jnp.transpose(x_all, (1, 0, 2)).reshape(T * twoB, D)      # (T*2B,D)

    w_ih_t = jnp.transpose(w_ih).astype(jnp.float32)                 # (D, 4H)
    w_hh_t = jnp.transpose(w_hh).astype(jnp.float32)                 # (H, 4H)
    b = (b_ih + b_hh).reshape(1, H4).astype(jnp.float32)             # (1, 4H)

    kernel = functools.partial(_siamese_kernel, B=B, T=T, H=H)
    out = pl.pallas_call(
        kernel,
        out_shape=jax.ShapeDtypeStruct((B, 128), jnp.float32),
        grid=(1,),
        in_specs=[
            pl.BlockSpec((T * twoB, D), lambda i: (0, 0)),
            pl.BlockSpec((D, H4), lambda i: (0, 0)),
            pl.BlockSpec((H, H4), lambda i: (0, 0)),
            pl.BlockSpec((1, H4), lambda i: (0, 0)),
        ],
        out_specs=pl.BlockSpec((B, 128), lambda i: (0, 0)),
        compiler_params=pltpu.CompilerParams(
            dimension_semantics=("arbitrary",)),
    )(x_tm, w_ih_t, w_hh_t, b)
    return out[:, 0]


def _reference(x1, x2, w_ih, w_hh, b_ih, b_hh):
    """Pure-JAX reference (highest matmul precision) matching torch semantics."""
    hp = jax.lax.Precision.HIGHEST

    def encode(x):
        B, T, _ = x.shape
        H = w_hh.shape[1]
        h = jnp.zeros((B, H), jnp.float32)
        c = jnp.zeros((B, H), jnp.float32)
        for t in range(T):
            gates = (jnp.dot(x[:, t, :], w_ih.T, precision=hp)
                     + jnp.dot(h, w_hh.T, precision=hp) + b_ih + b_hh)
            i, f, g, o = jnp.split(gates, 4, axis=1)
            c = jax.nn.sigmoid(f) * c + jax.nn.sigmoid(i) * jnp.tanh(g)
            h = jax.nn.sigmoid(o) * jnp.tanh(c)
        return h

    e1, e2 = encode(x1), encode(x2)
    e1 = e1 / jnp.maximum(
        jnp.sqrt(jnp.sum(e1 * e1, axis=1, keepdims=True)), 1e-12)
    e2 = e2 / jnp.maximum(
        jnp.sqrt(jnp.sum(e2 * e2, axis=1, keepdims=True)), 1e-12)
    d = e1 - e2
    return jnp.sqrt(jnp.sum(d * d, axis=1))


if __name__ == "__main__":
    B, T = 2, 8          # batch, sequence length
    input_size = 4       # features per timestep
    hidden_size = 32     # encoder hidden size

    key = jax.random.PRNGKey(0)
    k1, k2, kw1, kw2, kb1, kb2 = jax.random.split(key, 6)

    x1 = jax.random.normal(k1, (B, T, input_size), dtype=jnp.float32)
    x2 = jax.random.normal(k2, (B, T, input_size), dtype=jnp.float32)

    # PyTorch-style LSTM parameter init U(-1/sqrt(H), 1/sqrt(H))
    bound = 1.0 / (hidden_size ** 0.5)
    w_ih = jax.random.uniform(kw1, (4 * hidden_size, input_size),
                              minval=-bound, maxval=bound, dtype=jnp.float32)
    w_hh = jax.random.uniform(kw2, (4 * hidden_size, hidden_size),
                              minval=-bound, maxval=bound, dtype=jnp.float32)
    b_ih = jax.random.uniform(kb1, (4 * hidden_size,),
                              minval=-bound, maxval=bound, dtype=jnp.float32)
    b_hh = jax.random.uniform(kb2, (4 * hidden_size,),
                              minval=-bound, maxval=bound, dtype=jnp.float32)

    dist = siamese_forward(x1, x2, w_ih, w_hh, b_ih, b_hh)
    jax.block_until_ready(dist)
    assert dist.shape == (B,)

    ref = _reference(x1, x2, w_ih, w_hh, b_ih, b_hh)
    jax.block_until_ready(ref)
    assert jnp.all(jnp.isfinite(dist))
    assert bool(jnp.allclose(dist, ref, atol=1e-3, rtol=1e-3))

    print("KERNEL_OK")
</pallas_src>

<mosaic_0001>
module attributes {stable_mosaic.version = 11 : i64} {
  func.func @_siamese_kernel(%arg0: i32, %arg1: memref<32x4xf32, #tpu.memory_space<vmem>>, %arg2: memref<4x128xf32, #tpu.memory_space<vmem>>, %arg3: memref<32x128xf32, #tpu.memory_space<vmem>>, %arg4: memref<1x128xf32, #tpu.memory_space<vmem>>, %arg5: memref<2x128xf32, #tpu.memory_space<vmem>>) attributes {dimension_semantics = [#tpu.dimension_semantics<arbitrary>], iteration_bounds = array<i64: 1>, scalar_prefetch = 0 : i64, scratch_operands = 0 : i64, tpu.core_type = #tpu.core_type<tc>, window_params = [{pipeline_mode = #tpu.pipeline_mode<synchronous>, transform_indices = @transform_0, window_bounds = array<i64: 32, 4>}, {pipeline_mode = #tpu.pipeline_mode<synchronous>, transform_indices = @transform_1, window_bounds = array<i64: 4, 128>}, {pipeline_mode = #tpu.pipeline_mode<synchronous>, transform_indices = @transform_2, window_bounds = array<i64: 32, 128>}, {pipeline_mode = #tpu.pipeline_mode<synchronous>, transform_indices = @transform_3, window_bounds = array<i64: 1, 128>}, {pipeline_mode = #tpu.pipeline_mode<synchronous>, transform_indices = @transform_4, window_bounds = array<i64: 2, 128>}]} {
    %c0 = arith.constant 0 : index
    %c0_0 = arith.constant 0 : index
    %0 = vector.load %arg3[%c0, %c0_0] : memref<32x128xf32, #tpu.memory_space<vmem>>, vector<32x128xf32>
    %c0_1 = arith.constant 0 : index
    %c0_2 = arith.constant 0 : index
    %1 = vector.load %arg1[%c0_1, %c0_2] : memref<32x4xf32, #tpu.memory_space<vmem>>, vector<32x4xf32>
    %c0_3 = arith.constant 0 : index
    %c0_4 = arith.constant 0 : index
    %2 = vector.load %arg2[%c0_3, %c0_4] : memref<4x128xf32, #tpu.memory_space<vmem>>, vector<4x128xf32>
    %cst = arith.constant dense<0.000000e+00> : vector<32x128xf32>
    %3 = tpu.matmul %1, %2, %cst {dimension_numbers = #tpu.dot_dimension_numbers<[1], [0], [0], [1], [0, 0, 1, 1], [], []>} : vector<32x4xf32>, vector<4x128xf32>, vector<32x128xf32> -> vector<32x128xf32>
    %c0_5 = arith.constant 0 : index
    %c0_6 = arith.constant 0 : index
    %4 = vector.load %arg4[%c0_5, %c0_6] : memref<1x128xf32, #tpu.memory_space<vmem>>, vector<1x128xf32>
    %5 = vector.broadcast %4 : vector<1x128xf32> to vector<32x128xf32>
    %6 = arith.addf %3, %5 : vector<32x128xf32>
    %cst_7 = arith.constant 0.000000e+00 : f32
    %7 = vector.broadcast %cst_7 : f32 to vector<4x32xf32>
    %cst_8 = arith.constant 0.000000e+00 : f32
    %8 = vector.broadcast %cst_8 : f32 to vector<4x32xf32>
    %9 = vector.extract_strided_slice %6 {offsets = [0, 0], sizes = [4, 128], strides = [1, 1]} : vector<32x128xf32> to vector<4x128xf32>
    %cst_9 = arith.constant dense<0.000000e+00> : vector<4x128xf32>
    %10 = tpu.matmul %7, %0, %cst_9 {dimension_numbers = #tpu.dot_dimension_numbers<[1], [0], [0], [1], [0, 0, 1, 1], [], []>} : vector<4x32xf32>, vector<32x128xf32>, vector<4x128xf32> -> vector<4x128xf32>
    %11 = arith.addf %9, %10 : vector<4x128xf32>
    %12 = vector.extract_strided_slice %11 {offsets = [0, 0], sizes = [4, 32], strides = [1, 1]} : vector<4x128xf32> to vector<4x32xf32>
    %13 = arith.negf %12 : vector<4x32xf32>
    %14 = math.exp %13 : vector<4x32xf32>
    %cst_10 = arith.constant 1.000000e+00 : f32
    %15 = vector.broadcast %cst_10 : f32 to vector<4x32xf32>
    %16 = arith.addf %15, %14 : vector<4x32xf32>
    %17 = arith.divf %15, %16 : vector<4x32xf32>
    %18 = vector.extract_strided_slice %11 {offsets = [0, 32], sizes = [4, 32], strides = [1, 1]} : vector<4x128xf32> to vector<4x32xf32>
    %19 = arith.negf %18 : vector<4x32xf32>
    %20 = math.exp %19 : vector<4x32xf32>
    %cst_11 = arith.constant 1.000000e+00 : f32
    %21 = vector.broadcast %cst_11 : f32 to vector<4x32xf32>
    %22 = arith.addf %21, %20 : vector<4x32xf32>
    %23 = arith.divf %21, %22 : vector<4x32xf32>
    %24 = vector.extract_strided_slice %11 {offsets = [0, 64], sizes = [4, 32], strides = [1, 1]} : vector<4x128xf32> to vector<4x32xf32>
    %25 = math.tanh %24 : vector<4x32xf32>
    %26 = vector.extract_strided_slice %11 {offsets = [0, 96], sizes = [4, 32], strides = [1, 1]} : vector<4x128xf32> to vector<4x32xf32>
    %27 = arith.negf %26 : vector<4x32xf32>
    %28 = math.exp %27 : vector<4x32xf32>
    %cst_12 = arith.constant 1.000000e+00 : f32
    %29 = vector.broadcast %cst_12 : f32 to vector<4x32xf32>
    %30 = arith.addf %29, %28 : vector<4x32xf32>
    %31 = arith.divf %29, %30 : vector<4x32xf32>
    %32 = arith.mulf %23, %8 : vector<4x32xf32>
    %33 = arith.mulf %17, %25 : vector<4x32xf32>
    %34 = arith.addf %32, %33 : vector<4x32xf32>
    %35 = math.tanh %34 : vector<4x32xf32>
    %36 = arith.mulf %31, %35 : vector<4x32xf32>
    %37 = vector.extract_strided_slice %6 {offsets = [4, 0], sizes = [4, 128], strides = [1, 1]} : vector<32x128xf32> to vector<4x128xf32>
    %cst_13 = arith.constant dense<0.000000e+00> : vector<4x128xf32>
    %38 = tpu.matmul %36, %0, %cst_13 {dimension_numbers = #tpu.dot_dimension_numbers<[1], [0], [0], [1], [0, 0, 1, 1], [], []>} : vector<4x32xf32>, vector<32x128xf32>, vector<4x128xf32> -> vector<4x128xf32>
    %39 = arith.addf %37, %38 : vector<4x128xf32>
    %40 = vector.extract_strided_slice %39 {offsets = [0, 0], sizes = [4, 32], strides = [1, 1]} : vector<4x128xf32> to vector<4x32xf32>
    %41 = arith.negf %40 : vector<4x32xf32>
    %42 = math.exp %41 : vector<4x32xf32>
    %cst_14 = arith.constant 1.000000e+00 : f32
    %43 = vector.broadcast %cst_14 : f32 to vector<4x32xf32>
    %44 = arith.addf %43, %42 : vector<4x32xf32>
    %45 = arith.divf %43, %44 : vector<4x32xf32>
    %46 = vector.extract_strided_slice %39 {offsets = [0, 32], sizes = [4, 32], strides = [1, 1]} : vector<4x128xf32> to vector<4x32xf32>
    %47 = arith.negf %46 : vector<4x32xf32>
    %48 = math.exp %47 : vector<4x32xf32>
    %cst_15 = arith.constant 1.000000e+00 : f32
    %49 = vector.broadcast %cst_15 : f32 to vector<4x32xf32>
    %50 = arith.addf %49, %48 : vector<4x32xf32>
    %51 = arith.divf %49, %50 : vector<4x32xf32>
    %52 = vector.extract_strided_slice %39 {offsets = [0, 64], sizes = [4, 32], strides = [1, 1]} : vector<4x128xf32> to vector<4x32xf32>
    %53 = math.tanh %52 : vector<4x32xf32>
    %54 = vector.extract_strided_slice %39 {offsets = [0, 96], sizes = [4, 32], strides = [1, 1]} : vector<4x128xf32> to vector<4x32xf32>
    %55 = arith.negf %54 : vector<4x32xf32>
    %56 = math.exp %55 : vector<4x32xf32>
    %cst_16 = arith.constant 1.000000e+00 : f32
    %57 = vector.broadcast %cst_16 : f32 to vector<4x32xf32>
    %58 = arith.addf %57, %56 : vector<4x32xf32>
    %59 = arith.divf %57, %58 : vector<4x32xf32>
    %60 = arith.mulf %51, %34 : vector<4x32xf32>
    %61 = arith.mulf %45, %53 : vector<4x32xf32>
    %62 = arith.addf %60, %61 : vector<4x32xf32>
    %63 = math.tanh %62 : vector<4x32xf32>
    %64 = arith.mulf %59, %63 : vector<4x32xf32>
    %65 = vector.extract_strided_slice %6 {offsets = [8, 0], sizes = [4, 128], strides = [1, 1]} : vector<32x128xf32> to vector<4x128xf32>
    %cst_17 = arith.constant dense<0.000000e+00> : vector<4x128xf32>
    %66 = tpu.matmul %64, %0, %cst_17 {dimension_numbers = #tpu.dot_dimension_numbers<[1], [0], [0], [1], [0, 0, 1, 1], [], []>} : vector<4x32xf32>, vector<32x128xf32>, vector<4x128xf32> -> vector<4x128xf32>
    %67 = arith.addf %65, %66 : vector<4x128xf32>
    %68 = vector.extract_strided_slice %67 {offsets = [0, 0], sizes = [4, 32], strides = [1, 1]} : vector<4x128xf32> to vector<4x32xf32>
    %69 = arith.negf %68 : vector<4x32xf32>
    %70 = math.exp %69 : vector<4x32xf32>
    %cst_18 = arith.constant 1.000000e+00 : f32
    %71 = vector.broadcast %cst_18 : f32 to vector<4x32xf32>
    %72 = arith.addf %71, %70 : vector<4x32xf32>
    %73 = arith.divf %71, %72 : vector<4x32xf32>
    %74 = vector.extract_strided_slice %67 {offsets = [0, 32], sizes = [4, 32], strides = [1, 1]} : vector<4x128xf32> to vector<4x32xf32>
    %75 = arith.negf %74 : vector<4x32xf32>
    %76 = math.exp %75 : vector<4x32xf32>
    %cst_19 = arith.constant 1.000000e+00 : f32
    %77 = vector.broadcast %cst_19 : f32 to vector<4x32xf32>
    %78 = arith.addf %77, %76 : vector<4x32xf32>
    %79 = arith.divf %77, %78 : vector<4x32xf32>
    %80 = vector.extract_strided_slice %67 {offsets = [0, 64], sizes = [4, 32], strides = [1, 1]} : vector<4x128xf32> to vector<4x32xf32>
    %81 = math.tanh %80 : vector<4x32xf32>
    %82 = vector.extract_strided_slice %67 {offsets = [0, 96], sizes = [4, 32], strides = [1, 1]} : vector<4x128xf32> to vector<4x32xf32>
    %83 = arith.negf %82 : vector<4x32xf32>
    %84 = math.exp %83 : vector<4x32xf32>
    %cst_20 = arith.constant 1.000000e+00 : f32
    %85 = vector.broadcast %cst_20 : f32 to vector<4x32xf32>
    %86 = arith.addf %85, %84 : vector<4x32xf32>
    %87 = arith.divf %85, %86 : vector<4x32xf32>
    %88 = arith.mulf %79, %62 : vector<4x32xf32>
    %89 = arith.mulf %73, %81 : vector<4x32xf32>
    %90 = arith.addf %88, %89 : vector<4x32xf32>
    %91 = math.tanh %90 : vector<4x32xf32>
    %92 = arith.mulf %87, %91 : vector<4x32xf32>
    %93 = vector.extract_strided_slice %6 {offsets = [12, 0], sizes = [4, 128], strides = [1, 1]} : vector<32x128xf32> to vector<4x128xf32>
    %cst_21 = arith.constant dense<0.000000e+00> : vector<4x128xf32>
    %94 = tpu.matmul %92, %0, %cst_21 {dimension_numbers = #tpu.dot_dimension_numbers<[1], [0], [0], [1], [0, 0, 1, 1], [], []>} : vector<4x32xf32>, vector<32x128xf32>, vector<4x128xf32> -> vector<4x128xf32>
    %95 = arith.addf %93, %94 : vector<4x128xf32>
    %96 = vector.extract_strided_slice %95 {offsets = [0, 0], sizes = [4, 32], strides = [1, 1]} : vector<4x128xf32> to vector<4x32xf32>
    %97 = arith.negf %96 : vector<4x32xf32>
    %98 = math.exp %97 : vector<4x32xf32>
    %cst_22 = arith.constant 1.000000e+00 : f32
    %99 = vector.broadcast %cst_22 : f32 to vector<4x32xf32>
    %100 = arith.addf %99, %98 : vector<4x32xf32>
    %101 = arith.divf %99, %100 : vector<4x32xf32>
    %102 = vector.extract_strided_slice %95 {offsets = [0, 32], sizes = [4, 32], strides = [1, 1]} : vector<4x128xf32> to vector<4x32xf32>
    %103 = arith.negf %102 : vector<4x32xf32>
    %104 = math.exp %103 : vector<4x32xf32>
    %cst_23 = arith.constant 1.000000e+00 : f32
    %105 = vector.broadcast %cst_23 : f32 to vector<4x32xf32>
    %106 = arith.addf %105, %104 : vector<4x32xf32>
    %107 = arith.divf %105, %106 : vector<4x32xf32>
    %108 = vector.extract_strided_slice %95 {offsets = [0, 64], sizes = [4, 32], strides = [1, 1]} : vector<4x128xf32> to vector<4x32xf32>
    %109 = math.tanh %108 : vector<4x32xf32>
    %110 = vector.extract_strided_slice %95 {offsets = [0, 96], sizes = [4, 32], strides = [1, 1]} : vector<4x128xf32> to vector<4x32xf32>
    %111 = arith.negf %110 : vector<4x32xf32>
    %112 = math.exp %111 : vector<4x32xf32>
    %cst_24 = arith.constant 1.000000e+00 : f32
    %113 = vector.broadcast %cst_24 : f32 to vector<4x32xf32>
    %114 = arith.addf %113, %112 : vector<4x32xf32>
    %115 = arith.divf %113, %114 : vector<4x32xf32>
    %116 = arith.mulf %107, %90 : vector<4x32xf32>
    %117 = arith.mulf %101, %109 : vector<4x32xf32>
    %118 = arith.addf %116, %117 : vector<4x32xf32>
    %119 = math.tanh %118 : vector<4x32xf32>
    %120 = arith.mulf %115, %119 : vector<4x32xf32>
    %121 = vector.extract_strided_slice %6 {offsets = [16, 0], sizes = [4, 128], strides = [1, 1]} : vector<32x128xf32> to vector<4x128xf32>
    %cst_25 = arith.constant dense<0.000000e+00> : vector<4x128xf32>
    %122 = tpu.matmul %120, %0, %cst_25 {dimension_numbers = #tpu.dot_dimension_numbers<[1], [0], [0], [1], [0, 0, 1, 1], [], []>} : vector<4x32xf32>, vector<32x128xf32>, vector<4x128xf32> -> vector<4x128xf32>
    %123 = arith.addf %121, %122 : vector<4x128xf32>
    %124 = vector.extract_strided_slice %123 {offsets = [0, 0], sizes = [4, 32], strides = [1, 1]} : vector<4x128xf32> to vector<4x32xf32>
    %125 = arith.negf %124 : vector<4x32xf32>
    %126 = math.exp %125 : vector<4x32xf32>
    %cst_26 = arith.constant 1.000000e+00 : f32
    %127 = vector.broadcast %cst_26 : f32 to vector<4x32xf32>
    %128 = arith.addf %127, %126 : vector<4x32xf32>
    %129 = arith.divf %127, %128 : vector<4x32xf32>
    %130 = vector.extract_strided_slice %123 {offsets = [0, 32], sizes = [4, 32], strides = [1, 1]} : vector<4x128xf32> to vector<4x32xf32>
    %131 = arith.negf %130 : vector<4x32xf32>
    %132 = math.exp %131 : vector<4x32xf32>
    %cst_27 = arith.constant 1.000000e+00 : f32
    %133 = vector.broadcast %cst_27 : f32 to vector<4x32xf32>
    %134 = arith.addf %133, %132 : vector<4x32xf32>
    %135 = arith.divf %133, %134 : vector<4x32xf32>
    %136 = vector.extract_strided_slice %123 {offsets = [0, 64], sizes = [4, 32], strides = [1, 1]} : vector<4x128xf32> to vector<4x32xf32>
    %137 = math.tanh %136 : vector<4x32xf32>
    %138 = vector.extract_strided_slice %123 {offsets = [0, 96], sizes = [4, 32], strides = [1, 1]} : vector<4x128xf32> to vector<4x32xf32>
    %139 = arith.negf %138 : vector<4x32xf32>
    %140 = math.exp %139 : vector<4x32xf32>
    %cst_28 = arith.constant 1.000000e+00 : f32
    %141 = vector.broadcast %cst_28 : f32 to vector<4x32xf32>
    %142 = arith.addf %141, %140 : vector<4x32xf32>
    %143 = arith.divf %141, %142 : vector<4x32xf32>
    %144 = arith.mulf %135, %118 : vector<4x32xf32>
    %145 = arith.mulf %129, %137 : vector<4x32xf32>
    %146 = arith.addf %144, %145 : vector<4x32xf32>
    %147 = math.tanh %146 : vector<4x32xf32>
    %148 = arith.mulf %143, %147 : vector<4x32xf32>
    %149 = vector.extract_strided_slice %6 {offsets = [20, 0], sizes = [4, 128], strides = [1, 1]} : vector<32x128xf32> to vector<4x128xf32>
    %cst_29 = arith.constant dense<0.000000e+00> : vector<4x128xf32>
    %150 = tpu.matmul %148, %0, %cst_29 {dimension_numbers = #tpu.dot_dimension_numbers<[1], [0], [0], [1], [0, 0, 1, 1], [], []>} : vector<4x32xf32>, vector<32x128xf32>, vector<4x128xf32> -> vector<4x128xf32>
    %151 = arith.addf %149, %150 : vector<4x128xf32>
    %152 = vector.extract_strided_slice %151 {offsets = [0, 0], sizes = [4, 32], strides = [1, 1]} : vector<4x128xf32> to vector<4x32xf32>
    %153 = arith.negf %152 : vector<4x32xf32>
    %154 = math.exp %153 : vector<4x32xf32>
    %cst_30 = arith.constant 1.000000e+00 : f32
    %155 = vector.broadcast %cst_30 : f32 to vector<4x32xf32>
    %156 = arith.addf %155, %154 : vector<4x32xf32>
    %157 = arith.divf %155, %156 : vector<4x32xf32>
    %158 = vector.extract_strided_slice %151 {offsets = [0, 32], sizes = [4, 32], strides = [1, 1]} : vector<4x128xf32> to vector<4x32xf32>
    %159 = arith.negf %158 : vector<4x32xf32>
    %160 = math.exp %159 : vector<4x32xf32>
    %cst_31 = arith.constant 1.000000e+00 : f32
    %161 = vector.broadcast %cst_31 : f32 to vector<4x32xf32>
    %162 = arith.addf %161, %160 : vector<4x32xf32>
    %163 = arith.divf %161, %162 : vector<4x32xf32>
    %164 = vector.extract_strided_slice %151 {offsets = [0, 64], sizes = [4, 32], strides = [1, 1]} : vector<4x128xf32> to vector<4x32xf32>
    %165 = math.tanh %164 : vector<4x32xf32>
    %166 = vector.extract_strided_slice %151 {offsets = [0, 96], sizes = [4, 32], strides = [1, 1]} : vector<4x128xf32> to vector<4x32xf32>
    %167 = arith.negf %166 : vector<4x32xf32>
    %168 = math.exp %167 : vector<4x32xf32>
    %cst_32 = arith.constant 1.000000e+00 : f32
    %169 = vector.broadcast %cst_32 : f32 to vector<4x32xf32>
    %170 = arith.addf %169, %168 : vector<4x32xf32>
    %171 = arith.divf %169, %170 : vector<4x32xf32>
    %172 = arith.mulf %163, %146 : vector<4x32xf32>
    %173 = arith.mulf %157, %165 : vector<4x32xf32>
    %174 = arith.addf %172, %173 : vector<4x32xf32>
    %175 = math.tanh %174 : vector<4x32xf32>
    %176 = arith.mulf %171, %175 : vector<4x32xf32>
    %177 = vector.extract_strided_slice %6 {offsets = [24, 0], sizes = [4, 128], strides = [1, 1]} : vector<32x128xf32> to vector<4x128xf32>
    %cst_33 = arith.constant dense<0.000000e+00> : vector<4x128xf32>
    %178 = tpu.matmul %176, %0, %cst_33 {dimension_numbers = #tpu.dot_dimension_numbers<[1], [0], [0], [1], [0, 0, 1, 1], [], []>} : vector<4x32xf32>, vector<32x128xf32>, vector<4x128xf32> -> vector<4x128xf32>
    %179 = arith.addf %177, %178 : vector<4x128xf32>
    %180 = vector.extract_strided_slice %179 {offsets = [0, 0], sizes = [4, 32], strides = [1, 1]} : vector<4x128xf32> to vector<4x32xf32>
    %181 = arith.negf %180 : vector<4x32xf32>
    %182 = math.exp %181 : vector<4x32xf32>
    %cst_34 = arith.constant 1.000000e+00 : f32
    %183 = vector.broadcast %cst_34 : f32 to vector<4x32xf32>
    %184 = arith.addf %183, %182 : vector<4x32xf32>
    %185 = arith.divf %183, %184 : vector<4x32xf32>
    %186 = vector.extract_strided_slice %179 {offsets = [0, 32], sizes = [4, 32], strides = [1, 1]} : vector<4x128xf32> to vector<4x32xf32>
    %187 = arith.negf %186 : vector<4x32xf32>
    %188 = math.exp %187 : vector<4x32xf32>
    %cst_35 = arith.constant 1.000000e+00 : f32
    %189 = vector.broadcast %cst_35 : f32 to vector<4x32xf32>
    %190 = arith.addf %189, %188 : vector<4x32xf32>
    %191 = arith.divf %189, %190 : vector<4x32xf32>
    %192 = vector.extract_strided_slice %179 {offsets = [0, 64], sizes = [4, 32], strides = [1, 1]} : vector<4x128xf32> to vector<4x32xf32>
    %193 = math.tanh %192 : vector<4x32xf32>
    %194 = vector.extract_strided_slice %179 {offsets = [0, 96], sizes = [4, 32], strides = [1, 1]} : vector<4x128xf32> to vector<4x32xf32>
    %195 = arith.negf %194 : vector<4x32xf32>
    %196 = math.exp %195 : vector<4x32xf32>
    %cst_36 = arith.constant 1.000000e+00 : f32
    %197 = vector.broadcast %cst_36 : f32 to vector<4x32xf32>
    %198 = arith.addf %197, %196 : vector<4x32xf32>
    %199 = arith.divf %197, %198 : vector<4x32xf32>
    %200 = arith.mulf %191, %174 : vector<4x32xf32>
    %201 = arith.mulf %185, %193 : vector<4x32xf32>
    %202 = arith.addf %200, %201 : vector<4x32xf32>
    %203 = math.tanh %202 : vector<4x32xf32>
    %204 = arith.mulf %199, %203 : vector<4x32xf32>
    %205 = vector.extract_strided_slice %6 {offsets = [28, 0], sizes = [4, 128], strides = [1, 1]} : vector<32x128xf32> to vector<4x128xf32>
    %cst_37 = arith.constant dense<0.000000e+00> : vector<4x128xf32>
    %206 = tpu.matmul %204, %0, %cst_37 {dimension_numbers = #tpu.dot_dimension_numbers<[1], [0], [0], [1], [0, 0, 1, 1], [], []>} : vector<4x32xf32>, vector<32x128xf32>, vector<4x128xf32> -> vector<4x128xf32>
    %207 = arith.addf %205, %206 : vector<4x128xf32>
    %208 = vector.extract_strided_slice %207 {offsets = [0, 0], sizes = [4, 32], strides = [1, 1]} : vector<4x128xf32> to vector<4x32xf32>
    %209 = arith.negf %208 : vector<4x32xf32>
    %210 = math.exp %209 : vector<4x32xf32>
    %cst_38 = arith.constant 1.000000e+00 : f32
    %211 = vector.broadcast %cst_38 : f32 to vector<4x32xf32>
    %212 = arith.addf %211, %210 : vector<4x32xf32>
    %213 = arith.divf %211, %212 : vector<4x32xf32>
    %214 = vector.extract_strided_slice %207 {offsets = [0, 32], sizes = [4, 32], strides = [1, 1]} : vector<4x128xf32> to vector<4x32xf32>
    %215 = arith.negf %214 : vector<4x32xf32>
    %216 = math.exp %215 : vector<4x32xf32>
    %cst_39 = arith.constant 1.000000e+00 : f32
    %217 = vector.broadcast %cst_39 : f32 to vector<4x32xf32>
    %218 = arith.addf %217, %216 : vector<4x32xf32>
    %219 = arith.divf %217, %218 : vector<4x32xf32>
    %220 = vector.extract_strided_slice %207 {offsets = [0, 64], sizes = [4, 32], strides = [1, 1]} : vector<4x128xf32> to vector<4x32xf32>
    %221 = math.tanh %220 : vector<4x32xf32>
    %222 = vector.extract_strided_slice %207 {offsets = [0, 96], sizes = [4, 32], strides = [1, 1]} : vector<4x128xf32> to vector<4x32xf32>
    %223 = arith.negf %222 : vector<4x32xf32>
    %224 = math.exp %223 : vector<4x32xf32>
    %cst_40 = arith.constant 1.000000e+00 : f32
    %225 = vector.broadcast %cst_40 : f32 to vector<4x32xf32>
    %226 = arith.addf %225, %224 : vector<4x32xf32>
    %227 = arith.divf %225, %226 : vector<4x32xf32>
    %228 = arith.mulf %219, %202 : vector<4x32xf32>
    %229 = arith.mulf %213, %221 : vector<4x32xf32>
    %230 = arith.addf %228, %229 : vector<4x32xf32>
    %231 = math.tanh %230 : vector<4x32xf32>
    %232 = arith.mulf %227, %231 : vector<4x32xf32>
    %233 = vector.extract_strided_slice %232 {offsets = [0, 0], sizes = [2, 32], strides = [1, 1]} : vector<4x32xf32> to vector<2x32xf32>
    %234 = vector.extract_strided_slice %232 {offsets = [2, 0], sizes = [2, 32], strides = [1, 1]} : vector<4x32xf32> to vector<2x32xf32>
    %235 = arith.mulf %233, %233 : vector<2x32xf32>
    %cst_41 = arith.constant dense<0.000000e+00> : vector<2xf32>
    %236 = vector.multi_reduction <add>, %235, %cst_41 [1] : vector<2x32xf32> to vector<2xf32>
    %237 = vector.shape_cast %236 : vector<2xf32> to vector<2x1xf32>
    %238 = arith.mulf %234, %234 : vector<2x32xf32>
    %cst_42 = arith.constant dense<0.000000e+00> : vector<2xf32>
    %239 = vector.multi_reduction <add>, %238, %cst_42 [1] : vector<2x32xf32> to vector<2xf32>
    %240 = vector.shape_cast %239 : vector<2xf32> to vector<2x1xf32>
    %cst_43 = arith.constant 1.000000e-24 : f32
    %241 = vector.broadcast %cst_43 : f32 to vector<2x1xf32>
    %242 = arith.maximumf %237, %241 : vector<2x1xf32>
    %243 = math.rsqrt %242 : vector<2x1xf32>
    %244 = vector.broadcast %243 : vector<2x1xf32> to vector<2x32xf32>
    %245 = arith.mulf %233, %244 : vector<2x32xf32>
    %cst_44 = arith.constant 1.000000e-24 : f32
    %246 = vector.broadcast %cst_44 : f32 to vector<2x1xf32>
    %247 = arith.maximumf %240, %246 : vector<2x1xf32>
    %248 = math.rsqrt %247 : vector<2x1xf32>
    %249 = vector.broadcast %248 : vector<2x1xf32> to vector<2x32xf32>
    %250 = arith.mulf %234, %249 : vector<2x32xf32>
    %251 = arith.subf %245, %250 : vector<2x32xf32>
    %252 = arith.mulf %251, %251 : vector<2x32xf32>
    %cst_45 = arith.constant dense<0.000000e+00> : vector<2xf32>
    %253 = vector.multi_reduction <add>, %252, %cst_45 [1] : vector<2x32xf32> to vector<2xf32>
    %254 = vector.shape_cast %253 : vector<2xf32> to vector<2x1xf32>
    %255 = math.sqrt %254 : vector<2x1xf32>
    %256 = vector.shape_cast %255 : vector<2x1xf32> to vector<2x1xf32>
    %257 = vector.broadcast %256 : vector<2x1xf32> to vector<2x128xf32>
    %c0_46 = arith.constant 0 : index
    %c0_47 = arith.constant 0 : index
    %258 = vector.load %arg5[%c0_46, %c0_47] : memref<2x128xf32, #tpu.memory_space<vmem>>, vector<2x128xf32>
    tpu.vector_store %arg5[%c0_46, %c0_47], %257 {strides = array<i32>} : memref<2x128xf32, #tpu.memory_space<vmem>>, vector<2x128xf32>,
    return
  }
  func.func @transform_0(%arg0: i32) -> (i32, i32) {
    %c0_i32 = arith.constant 0 : i32
    %c0_i32_0 = arith.constant 0 : i32
    %c0_i32_1 = arith.constant 0 : i32
    return %c0_i32, %c0_i32_0 : i32, i32
  }
  func.func @transform_1(%arg0: i32) -> (i32, i32) {
    %c0_i32 = arith.constant 0 : i32
    %c0_i32_0 = arith.constant 0 : i32
    %c0_i32_1 = arith.constant 0 : i32
    return %c0_i32, %c0_i32_0 : i32, i32
  }
  func.func @transform_2(%arg0: i32) -> (i32, i32) {
    %c0_i32 = arith.constant 0 : i32
    %c0_i32_0 = arith.constant 0 : i32
    %c0_i32_1 = arith.constant 0 : i32
    return %c0_i32, %c0_i32_0 : i32, i32
  }
  func.func @transform_3(%arg0: i32) -> (i32, i32) {
    %c0_i32 = arith.constant 0 : i32
    %c0_i32_0 = arith.constant 0 : i32
    %c0_i32_1 = arith.constant 0 : i32
    return %c0_i32, %c0_i32_0 : i32, i32
  }
  func.func @transform_4(%arg0: i32) -> (i32, i32) {
    %c0_i32 = arith.constant 0 : i32
    %c0_i32_0 = arith.constant 0 : i32
    %c0_i32_1 = arith.constant 0 : i32
    return %c0_i32, %c0_i32_0 : i32, i32
  }
}

</mosaic_0001>

<bundles_post_ra>
// kernel: tpu_custom_call.1
= control target key start
LH: loop header
LB: loop body
LE: loop exit
PB: predicated region body
PF: predicated region fallthrough
CT: control target
= control target key end

     0   :  { %vm44_vm0 = vcmask 1043456   ;;  %vm31_vm1 = vcmask 31744   ;;  %s969_s0 = inlined_call_operand.vmem [shape: f32[32,4], index: 0, kind: input, shape index: {}]   ;;  %s970_s1 = inlined_call_operand.vmem [shape: f32[4,128], index: 1, kind: input, shape index: {}]   ;;  %s971_s2 = inlined_call_operand.vmem [shape: f32[32,128], index: 2, kind: input, shape index: {}]   ;;  %s972_s3 = inlined_call_operand.vmem [shape: f32[1,128], index: 3, kind: input, shape index: {}]   ;;  %s973_s4 = inlined_call_operand.hbm [shape: f32[2,128], index: 4, kind: output, shape index: {}]  }
   0x1   :  { %v847_v0 = vld [vmem:[%s971_s2 + $0x18] sm:$0xff]  ;;  %v852_v1 = vld [vmem:[%s971_s2 + $0x10] sm:$0xff]  ;;  %v26_v2 = vld [vmem:[%s970_s1] sm:$0xf] }
   0x2   :  { %93 = vmatpush.msra.mxu1 %v847_v0  ;;  %694 = vmatpush.msk.msra.mxu0 %vm44_vm0, %v26_v2  ;;  %v22_v3 = vld [vmem:[%s969_s0] sm:$0xff]  ;;  %v864_v4 = vld [vmem:[%s971_s2 + $0x8] sm:$0xff] }
   0x3   :  { %695 = vmatmul.msk.f32.vlgmr.msra.gmra.mxu0 %vm31_vm1, %v22_v3  ;;  %156 = vmatpush.msra.mxu2 %v847_v0 }
   0x4   :  { %9 = vsyncpa [#allocation3], 0  ;;  %94 = vmatpush.msra.mxu1 %v852_v1  ;;  %226 = vmatpush.msra.mxu3 %v847_v0  ;;  %v873_v5 = vld [vmem:[%s971_s2] sm:$0xff]  ;;  %v815_v6 = vmov 0.0   ;;  %s816_s27 = smov 64   ;;  %vm77_vm6 = vcmask 261120  }
   0x5   :  { %157 = vmatpush.msra.mxu2 %v852_v1  ;;  %v902_v7 = vld [vmem:[%s972_s3] ss:$0 sm:$0xff]  ;;  %s817_s3 = smov 32   ;;  %v23_v62 = vld [vmem:[%s969_s0 + $0x8] sm:$0xff]  ;;  %s685_s11 = sshll.u32 %s973_s4, 4  ;;  %s686_s11 = int_to_ptr.hbm [resolvable:$true] %s685_s11 }
   0x6   :  { %95 = vmatpush.msra.mxu1 %v864_v4  ;;  %227 = vmatpush.msra.mxu3 %v852_v1 }
   0x7   :  { %158 = vmatpush.msra.mxu2 %v864_v4 }
   0x8   :  { %96 = vmatpush.msra.mxu1 %v873_v5  ;;  %228 = vmatpush.msra.mxu3 %v864_v4 }
   0x9   :  { %97 = vmatmul.f32.vlgmr.msra.gmra.mxu1 %v815_v6  ;;  %159 = vmatpush.msra.mxu2 %v873_v5 }
   0xa   :  { %229 = vmatpush.msra.mxu3 %v873_v5  ;;  %292 = vmatpush.msrb.mxu1 %v847_v0 }
   0xb   :  { %362 = vmatpush.msrb.mxu2 %v847_v0  ;;  %696 = vmatmul.msk.f32.gmra.mxu0 %vm31_vm1, %v23_v62 }
   0xc   :  { %428 = vmatpush.msrb.mxu3 %v847_v0  ;;  %293 = vmatpush.msrb.mxu1 %v852_v1 }
   0xd   :  { %363 = vmatpush.msrb.mxu2 %v852_v1 }
   0xe   :  { %429 = vmatpush.msrb.mxu3 %v852_v1  ;;  %294 = vmatpush.msrb.mxu1 %v864_v4 }
   0xf   :  { %364 = vmatpush.msrb.mxu2 %v864_v4 }
  0x10   :  { %430 = vmatpush.msrb.mxu3 %v864_v4  ;;  %295 = vmatpush.msrb.mxu1 %v873_v5 }
  0x11   :  { %365 = vmatpush.msrb.mxu2 %v873_v5 }
  0x12   :  { %431 = vmatpush.msrb.mxu3 %v873_v5  ;;  %498 = vmatpush.msra.mxu1 %v847_v0 }
  0x14   :  { %499 = vmatpush.msra.mxu1 %v852_v1 }
  0x16   :  { %500 = vmatpush.msra.mxu1 %v864_v4 }
  0x18   :  { %501 = vmatpush.msra.mxu1 %v873_v5 }
  0x80   :  { %v65_v8 = vpop.f32.mrf.mxu0 }
  0x81   :  { %v66_v9 = vadd.f32 %v902_v7, %v65_v8 }
  0x86   :  { %v98_v10 = vpop.f32.mrf.mxu1 }
  0x87   :  { %v101_v11 = vadd.f32 %v98_v10, %v66_v9 }
  0x89   :  { %719 = vtanh.f32 %v101_v11  ;;  %v699_v13 = vmul.f32 -1.442695, %v101_v11 }
  0x8b   :  { %721 = vpow2.f32 %v699_v13 }
  0x8f   :  { %v720_v12 = vpop.eup %719 }
  0x90   :  { %124 = vrot.lane.b32.xlu0 %v720_v12, %s816_s27 }
  0x91   :  { %v722_v14 = vpop.eup %721 }
  0x92   :  { %v105_v15 = vadd.f32 1.0, %v722_v14 }
  0x94   :  { %723 = vrcp.f32 %v105_v15  ;;  %v117_v21 = vand.u32 2147483648, %v105_v15  ;;  %vm111_vm3 = vweird.f32 %v105_v15  ;;  %v115_v22 = vand.u32 2147483647, %v105_v15 }
  0x96   :  { %v118_v24 = vor.u32 1.1754944e-38, %v117_v21  ;;  %vm116_vm5 = vcmp.eq.f32.partialorder %v115_v22, 8.507059e+37 }
  0x9a   :  { %v724_v16 = vpop.eup %723 }
  0x9b   :  { %v107_v17 = vmul.f32 %v724_v16, %v105_v15  ;;  %vm112_vm2 = vweird.f32 %v724_v16 }
  0x9c   :  { %vm113_vm4 = vmor %vm111_vm3, %vm112_vm2 }
  0x9d   :  { %v108_v18 = vsub.f32 1.0, %v107_v17 }
  0x9f   :  { %v109_v19 = vmul.f32 %v724_v16, %v108_v18 }
  0xa1   :  { %v110_v20 = vadd.f32 %v724_v16, %v109_v19 }
  0xa3   :  { %v114_v23 = vsel %vm113_vm4, %v724_v16, %v110_v20 }
  0xa4   :  { %v119_v26 = vsel %vm116_vm5, %v118_v24, %v114_v23 }
  0xa5   :  { %v122_v28 = vmul.f32 0.0, %v119_v26 }
 0x102   :  { %v125_v25 = vpop.permute.xlu0 %124 }
 0x103   :  { %v127_v27 = vmul.f32 %v125_v25, %v119_v26 }
 0x105   :  { %129 = vrot.lane.b32.xlu0 %v127_v27, %s817_s3 }
 0x177   :  { %v130_v29 = vpop.permute.xlu0 %129 }
 0x178   :  { %v132_v30 = vadd.f32 %v130_v29, %v122_v28 }
 0x17a   :  { %725 = vtanh.f32 %v132_v30  ;;  %v189_v54 = vrot.slane %v132_v30, 4 }
 0x180   :  { %v726_v31 = vpop.eup %725 }
 0x181   :  { %135 = vrot.lane.b32.xlu1 %v726_v31, %s816_s27 }
 0x1f3   :  { %v136_v32 = vpop.permute.xlu1 %135 }
 0x1f4   :  { %v138_v33 = vmul.f32 %v136_v32, %v119_v26 }
 0x1f6   :  { %140 = vrot.lane.b32.xlu1 %v138_v33, %s817_s3 }
 0x268   :  { %v141_v34 = vpop.permute.xlu1 %140 }
 0x269   :  { %700 = vmatmul.msk.f32.vlgmr.msra.gmra.mxu2 %vm77_vm6, %v141_v34 }
 0x26a   :  { %564 = vmatpush.msra.mxu2 %v847_v0  ;;  %v68_v0 = vpop.f32.mrf.mxu0 }
 0x26c   :  { %565 = vmatpush.msra.mxu2 %v852_v1  ;;  %v69_v1 = vadd.f32 %v902_v7, %v68_v0 }
 0x26e   :  { %566 = vmatpush.msra.mxu2 %v864_v4 }
 0x270   :  { %567 = vmatpush.msra.mxu2 %v873_v5 }
 0x2ec   :  { %v161_v35 = vpop.f32.mrf.mxu2 }
 0x2ed   :  { %v165_v36 = vrot.slane %v161_v35, 4 }
 0x2ef   :  { %v167_v37 = vadd.f32 %v165_v36, %v66_v9 }
 0x2f1   :  { %727 = vtanh.f32 %v167_v37  ;;  %v701_v39 = vmul.f32 -1.442695, %v167_v37 }
 0x2f3   :  { %729 = vpow2.f32 %v701_v39 }
 0x2f7   :  { %v728_v38 = vpop.eup %727 }
 0x2f8   :  { %193 = vrot.lane.b32.xlu2 %v728_v38, %s816_s27 }
 0x2f9   :  { %v730_v40 = vpop.eup %729 }
 0x2fa   :  { %v171_v41 = vadd.f32 1.0, %v730_v40 }
 0x2fc   :  { %731 = vrcp.f32 %v171_v41  ;;  %v183_v47 = vand.u32 2147483648, %v171_v41  ;;  %vm177_vm8 = vweird.f32 %v171_v41  ;;  %v181_v48 = vand.u32 2147483647, %v171_v41 }
 0x2fe   :  { %v184_v50 = vor.u32 1.1754944e-38, %v183_v47  ;;  %vm182_vm10 = vcmp.eq.f32.partialorder %v181_v48, 8.507059e+37 }
 0x302   :  { %v732_v42 = vpop.eup %731 }
 0x303   :  { %v173_v43 = vmul.f32 %v732_v42, %v171_v41  ;;  %vm178_vm7 = vweird.f32 %v732_v42 }
 0x304   :  { %vm179_vm9 = vmor %vm177_vm8, %vm178_vm7 }
 0x305   :  { %v174_v44 = vsub.f32 1.0, %v173_v43 }
 0x307   :  { %v175_v45 = vmul.f32 %v732_v42, %v174_v44 }
 0x309   :  { %v176_v46 = vadd.f32 %v732_v42, %v175_v45 }
 0x30b   :  { %v180_v49 = vsel %vm179_vm9, %v732_v42, %v176_v46 }
 0x30c   :  { %v185_v52 = vsel %vm182_vm10, %v184_v50, %v180_v49 }
 0x30d   :  { %v191_v55 = vmul.f32 %v189_v54, %v185_v52 }
 0x352   :  { %v194_v51 = vpop.permute.xlu2 %193 }
 0x353   :  { %v196_v53 = vmul.f32 %v194_v51, %v185_v52 }
 0x355   :  { %198 = vrot.lane.b32.xlu2 %v196_v53, %s817_s3 }
 0x3af   :  { %v199_v56 = vpop.permute.xlu2 %198 }
 0x3b0   :  { %v201_v57 = vadd.f32 %v199_v56, %v191_v55  ;;  %v24_v56 = vld [vmem:[%s969_s0 + $0x10] sm:$0xff] }
 0x3b1   :  { %697 = vmatmul.msk.f32.gmra.mxu0 %vm31_vm1, %v24_v56 }
 0x3b2   :  { %733 = vtanh.f32 %v201_v57  ;;  %v256_v21 = vrot.slane %v201_v57, 4 }
 0x3b8   :  { %v734_v58 = vpop.eup %733 }
 0x3b9   :  { %204 = vrot.lane.b32.xlu0 %v734_v58, %s816_s27 }
 0x42b   :  { %v205_v59 = vpop.permute.xlu0 %204 }
 0x42c   :  { %v207_v60 = vmul.f32 %v205_v59, %v185_v52 }
 0x42e   :  { %v209_v61 = vrot.slane %v207_v60, 4  ;;  %v71_v58 = vpop.f32.mrf.mxu0 }
 0x42f   :  { %v72_v59 = vadd.f32 %v902_v7, %v71_v58 }
 0x430   :  { %210 = vrot.lane.b32.xlu1 %v209_v61, %s817_s3 }
 0x4a2   :  { %v211_v63 = vpop.permute.xlu1 %210 }
 0x4a3   :  { %702 = vmatmul.msk.f32.vlgmr.msra.gmra.mxu3 %vm77_vm6, %v211_v63 }
 0x526   :  { %v231_v2 = vpop.f32.mrf.mxu3 }
 0x527   :  { %v234_v3 = vadd.f32 %v231_v2, %v69_v1 }
 0x529   :  { %735 = vtanh.f32 %v234_v3  ;;  %v703_v5 = vmul.f32 -1.442695, %v234_v3 }
 0x52b   :  { %737 = vpow2.f32 %v703_v5 }
 0x52f   :  { %v736_v4 = vpop.eup %735 }
 0x530   :  { %260 = vrot.lane.b32.xlu2 %v736_v4, %s816_s27 }
 0x531   :  { %v738_v6 = vpop.eup %737 }
 0x532   :  { %v238_v8 = vadd.f32 1.0, %v738_v6 }
 0x534   :  { %739 = vrcp.f32 %v238_v8  ;;  %v250_v14 = vand.u32 2147483648, %v238_v8  ;;  %vm244_vm12 = vweird.f32 %v238_v8  ;;  %v248_v15 = vand.u32 2147483647, %v238_v8 }
 0x536   :  { %v251_v17 = vor.u32 1.1754944e-38, %v250_v14  ;;  %vm249_vm14 = vcmp.eq.f32.partialorder %v248_v15, 8.507059e+37 }
 0x53a   :  { %v740_v9 = vpop.eup %739 }
 0x53b   :  { %v240_v10 = vmul.f32 %v740_v9, %v238_v8  ;;  %vm245_vm11 = vweird.f32 %v740_v9 }
 0x53c   :  { %vm246_vm13 = vmor %vm244_vm12, %vm245_vm11 }
 0x53d   :  { %v241_v11 = vsub.f32 1.0, %v240_v10 }
 0x53f   :  { %v242_v12 = vmul.f32 %v740_v9, %v241_v11 }
 0x541   :  { %v243_v13 = vadd.f32 %v740_v9, %v242_v12 }
 0x543   :  { %v247_v16 = vsel %vm246_vm13, %v740_v9, %v243_v13 }
 0x544   :  { %v252_v19 = vsel %vm249_vm14, %v251_v17, %v247_v16 }
 0x545   :  { %v258_v22 = vmul.f32 %v256_v21, %v252_v19 }
 0x58a   :  { %v261_v18 = vpop.permute.xlu2 %260 }
 0x58b   :  { %v263_v20 = vmul.f32 %v261_v18, %v252_v19 }
 0x58d   :  { %265 = vrot.lane.b32.xlu0 %v263_v20, %s817_s3 }
 0x5ff   :  { %v266_v23 = vpop.permute.xlu0 %265 }
 0x600   :  { %v268_v24 = vadd.f32 %v266_v23, %v258_v22 }
 0x602   :  { %741 = vtanh.f32 %v268_v24  ;;  %v325_v48 = vrot.slane %v268_v24, 4 }
 0x608   :  { %v742_v25 = vpop.eup %741 }
 0x609   :  { %271 = vrot.lane.b32.xlu1 %v742_v25, %s816_s27 }
 0x67b   :  { %v272_v26 = vpop.permute.xlu1 %271 }
 0x67c   :  { %v274_v27 = vmul.f32 %v272_v26, %v252_v19 }
 0x67e   :  { %276 = vrot.lane.b32.xlu2 %v274_v27, %s817_s3 }
 0x6d8   :  { %v277_v28 = vpop.permute.xlu2 %276 }
 0x6d9   :  { %704 = vmatmul.msk.f32.vlgmr.msrb.gmra.mxu1 %vm77_vm6, %v277_v28 }
 0x756   :  { %v297_v29 = vpop.f32.mrf.mxu1 }
 0x757   :  { %v301_v30 = vrot.slane %v297_v29, 4 }
 0x759   :  { %v303_v31 = vadd.f32 %v301_v30, %v69_v1 }
 0x75b   :  { %743 = vtanh.f32 %v303_v31  ;;  %v705_v33 = vmul.f32 -1.442695, %v303_v31 }
 0x75d   :  { %745 = vpow2.f32 %v705_v33 }
 0x761   :  { %v744_v32 = vpop.eup %743 }
 0x762   :  { %329 = vrot.lane.b32.xlu0 %v744_v32, %s816_s27 }
 0x763   :  { %v746_v34 = vpop.eup %745 }
 0x764   :  { %v307_v35 = vadd.f32 1.0, %v746_v34 }
 0x766   :  { %747 = vrcp.f32 %v307_v35  ;;  %v319_v41 = vand.u32 2147483648, %v307_v35  ;;  %vm313_vm0 = vweird.f32 %v307_v35  ;;  %v317_v42 = vand.u32 2147483647, %v307_v35 }
 0x768   :  { %v320_v44 = vor.u32 1.1754944e-38, %v319_v41  ;;  %vm318_vm3 = vcmp.eq.f32.partialorder %v317_v42, 8.507059e+37 }
 0x76c   :  { %v748_v36 = vpop.eup %747 }
 0x76d   :  { %v309_v37 = vmul.f32 %v748_v36, %v307_v35  ;;  %vm314_vm15 = vweird.f32 %v748_v36 }
 0x76e   :  { %vm315_vm2 = vmor %vm313_vm0, %vm314_vm15 }
 0x76f   :  { %v310_v38 = vsub.f32 1.0, %v309_v37 }
 0x771   :  { %v311_v39 = vmul.f32 %v748_v36, %v310_v38 }
 0x773   :  { %v312_v40 = vadd.f32 %v748_v36, %v311_v39 }
 0x775   :  { %v316_v43 = vsel %vm315_vm2, %v748_v36, %v312_v40 }
 0x776   :  { %v321_v46 = vsel %vm318_vm3, %v320_v44, %v316_v43 }
 0x777   :  { %v327_v49 = vmul.f32 %v325_v48, %v321_v46 }
 0x7d4   :  { %v330_v45 = vpop.permute.xlu0 %329 }
 0x7d5   :  { %v332_v47 = vmul.f32 %v330_v45, %v321_v46 }
 0x7d7   :  { %334 = vrot.lane.b32.xlu1 %v332_v47, %s817_s3  ;;  %v25_v47 = vld [vmem:[%s969_s0 + $0x18] sm:$0xff]  ;;  %s818_s0 = smov [#allocation2]  }
 0x7d8   :  { %698 = vmatmul.msk.f32.gmra.mxu0 %vm31_vm1, %v25_v47  ;;  %s683_s8 = sshll.u32 %s818_s0, 4  ;;  %s684_s8 = int_to_ptr.vmem [resolvable:$true] %s683_s8 }
 0x849   :  { %v335_v50 = vpop.permute.xlu1 %334 }
 0x84a   :  { %v337_v51 = vadd.f32 %v335_v50, %v327_v49 }
 0x84c   :  { %749 = vtanh.f32 %v337_v51  ;;  %v392_v15 = vrot.slane %v337_v51, 4 }
 0x852   :  { %v750_v52 = vpop.eup %749 }
 0x853   :  { %340 = vrot.lane.b32.xlu2 %v750_v52, %s816_s27 }
 0x855   :  { %v74_v52 = vpop.f32.mrf.mxu0 }
 0x8ad   :  { %v341_v53 = vpop.permute.xlu2 %340 }
 0x8ae   :  { %v343_v54 = vmul.f32 %v341_v53, %v321_v46  ;;  %v75_v53 = vadd.f32 %v902_v7, %v74_v52 }
 0x8b0   :  { %v345_v55 = vrot.slane %v343_v54, 4 }
 0x8b2   :  { %346 = vrot.lane.b32.xlu0 %v345_v55, %s817_s3 }
 0x924   :  { %v347_v57 = vpop.permute.xlu0 %346 }
 0x925   :  { %706 = vmatmul.msk.f32.vlgmr.msrb.gmra.mxu2 %vm77_vm6, %v347_v57 }
 0x9a8   :  { %v367_v60 = vpop.f32.mrf.mxu2 }
 0x9a9   :  { %v370_v61 = vadd.f32 %v367_v60, %v72_v59 }
 0x9ab   :  { %751 = vtanh.f32 %v370_v61  ;;  %v707_v63 = vmul.f32 -1.442695, %v370_v61 }
 0x9ad   :  { %753 = vpow2.f32 %v707_v63 }
 0x9b1   :  { %v752_v62 = vpop.eup %751 }
 0x9b2   :  { %396 = vrot.lane.b32.xlu1 %v752_v62, %s816_s27 }
 0x9b3   :  { %v754_v0 = vpop.eup %753 }
 0x9b4   :  { %v374_v1 = vadd.f32 1.0, %v754_v0 }
 0x9b6   :  { %755 = vrcp.f32 %v374_v1  ;;  %v386_v8 = vand.u32 2147483648, %v374_v1  ;;  %vm380_vm5 = vweird.f32 %v374_v1  ;;  %v384_v9 = vand.u32 2147483647, %v374_v1 }
 0x9b8   :  { %v387_v11 = vor.u32 1.1754944e-38, %v386_v8  ;;  %vm385_vm8 = vcmp.eq.f32.partialorder %v384_v9, 8.507059e+37 }
 0x9bc   :  { %v756_v2 = vpop.eup %755 }
 0x9bd   :  { %v376_v3 = vmul.f32 %v756_v2, %v374_v1  ;;  %vm381_vm4 = vweird.f32 %v756_v2 }
 0x9be   :  { %vm382_vm7 = vmor %vm380_vm5, %vm381_vm4  ;;  %vm625_vm4 = vcmask 261126   ;;  %vm621_vm5 = vcmask 259076  }
 0x9bf   :  { %v377_v4 = vsub.f32 1.0, %v376_v3 }
 0x9c1   :  { %v378_v5 = vmul.f32 %v756_v2, %v377_v4 }
 0x9c3   :  { %v379_v6 = vadd.f32 %v756_v2, %v378_v5 }
 0x9c5   :  { %v383_v10 = vsel %vm382_vm7, %v756_v2, %v379_v6 }
 0x9c6   :  { %v388_v13 = vsel %vm385_vm8, %v387_v11, %v383_v10 }
 0x9c7   :  { %v394_v16 = vmul.f32 %v392_v15, %v388_v13 }
 0xa24   :  { %v397_v12 = vpop.permute.xlu1 %396 }
 0xa25   :  { %v399_v14 = vmul.f32 %v397_v12, %v388_v13 }
 0xa27   :  { %401 = vrot.lane.b32.xlu2 %v399_v14, %s817_s3 }
 0xa81   :  { %v402_v17 = vpop.permute.xlu2 %401 }
 0xa82   :  { %v404_v18 = vadd.f32 %v402_v17, %v394_v16 }
 0xa84   :  { %757 = vtanh.f32 %v404_v18  ;;  %v461_v42 = vrot.slane %v404_v18, 4 }
 0xa8a   :  { %v758_v19 = vpop.eup %757 }
 0xa8b   :  { %407 = vrot.lane.b32.xlu0 %v758_v19, %s816_s27 }
 0xafd   :  { %v408_v20 = vpop.permute.xlu0 %407 }
 0xafe   :  { %v410_v21 = vmul.f32 %v408_v20, %v388_v13 }
 0xb00   :  { %412 = vrot.lane.b32.xlu1 %v410_v21, %s817_s3 }
 0xb72   :  { %v413_v22 = vpop.permute.xlu1 %412 }
 0xb73   :  { %708 = vmatmul.msk.f32.vlgmr.msrb.gmra.mxu3 %vm77_vm6, %v413_v22 }
 0xbf6   :  { %v433_v23 = vpop.f32.mrf.mxu3 }
 0xbf7   :  { %v437_v24 = vrot.slane %v433_v23, 4 }
 0xbf9   :  { %v439_v25 = vadd.f32 %v437_v24, %v72_v59 }
 0xbfb   :  { %759 = vtanh.f32 %v439_v25  ;;  %v709_v27 = vmul.f32 -1.442695, %v439_v25 }
 0xbfd   :  { %761 = vpow2.f32 %v709_v27 }
 0xc01   :  { %v760_v26 = vpop.eup %759 }
 0xc02   :  { %465 = vrot.lane.b32.xlu2 %v760_v26, %s816_s27 }
 0xc03   :  { %v762_v28 = vpop.eup %761 }
 0xc04   :  { %v443_v29 = vadd.f32 1.0, %v762_v28 }
 0xc06   :  { %763 = vrcp.f32 %v443_v29  ;;  %v455_v35 = vand.u32 2147483648, %v443_v29  ;;  %vm449_vm10 = vweird.f32 %v443_v29  ;;  %v453_v36 = vand.u32 2147483647, %v443_v29 }
 0xc08   :  { %v456_v38 = vor.u32 1.1754944e-38, %v455_v35  ;;  %vm454_vm12 = vcmp.eq.f32.partialorder %v453_v36, 8.507059e+37 }
 0xc0c   :  { %v764_v30 = vpop.eup %763 }
 0xc0d   :  { %v445_v31 = vmul.f32 %v764_v30, %v443_v29  ;;  %vm450_vm9 = vweird.f32 %v764_v30 }
 0xc0e   :  { %vm451_vm11 = vmor %vm449_vm10, %vm450_vm9 }
 0xc0f   :  { %v446_v32 = vsub.f32 1.0, %v445_v31 }
 0xc11   :  { %v447_v33 = vmul.f32 %v764_v30, %v446_v32 }
 0xc13   :  { %v448_v34 = vadd.f32 %v764_v30, %v447_v33 }
 0xc15   :  { %v452_v37 = vsel %vm451_vm11, %v764_v30, %v448_v34 }
 0xc16   :  { %v457_v40 = vsel %vm454_vm12, %v456_v38, %v452_v37 }
 0xc17   :  { %v463_v43 = vmul.f32 %v461_v42, %v457_v40 }
 0xc5c   :  { %v466_v39 = vpop.permute.xlu2 %465 }
 0xc5d   :  { %v468_v41 = vmul.f32 %v466_v39, %v457_v40 }
 0xc5f   :  { %470 = vrot.lane.b32.xlu0 %v468_v41, %s817_s3 }
 0xcd1   :  { %v471_v44 = vpop.permute.xlu0 %470 }
 0xcd2   :  { %v473_v45 = vadd.f32 %v471_v44, %v463_v43 }
 0xcd4   :  { %765 = vtanh.f32 %v473_v45  ;;  %v528_v8 = vrot.slane %v473_v45, 4 }
 0xcda   :  { %v766_v46 = vpop.eup %765 }
 0xcdb   :  { %476 = vrot.lane.b32.xlu1 %v766_v46, %s816_s27 }
 0xd4d   :  { %v477_v48 = vpop.permute.xlu1 %476 }
 0xd4e   :  { %v479_v49 = vmul.f32 %v477_v48, %v457_v40 }
 0xd50   :  { %v481_v50 = vrot.slane %v479_v49, 4 }
 0xd52   :  { %482 = vrot.lane.b32.xlu2 %v481_v50, %s817_s3 }
 0xdac   :  { %v483_v51 = vpop.permute.xlu2 %482 }
 0xdad   :  { %710 = vmatmul.msk.f32.vlgmr.msra.gmra.mxu1 %vm77_vm6, %v483_v51 }
 0xe2a   :  { %v503_v54 = vpop.f32.mrf.mxu1 }
 0xe2b   :  { %v506_v55 = vadd.f32 %v503_v54, %v75_v53 }
 0xe2d   :  { %767 = vtanh.f32 %v506_v55  ;;  %v711_v57 = vmul.f32 -1.442695, %v506_v55 }
 0xe2f   :  { %769 = vpow2.f32 %v711_v57 }
 0xe33   :  { %v768_v56 = vpop.eup %767 }
 0xe34   :  { %532 = vrot.lane.b32.xlu0 %v768_v56, %s816_s27 }
 0xe35   :  { %v770_v58 = vpop.eup %769 }
 0xe36   :  { %v510_v59 = vadd.f32 1.0, %v770_v58 }
 0xe38   :  { %771 = vrcp.f32 %v510_v59  ;;  %v522_v1 = vand.u32 2147483648, %v510_v59  ;;  %vm516_vm13 = vweird.f32 %v510_v59  ;;  %v520_v7 = vand.u32 2147483647, %v510_v59 }
 0xe3a   :  { %v523_v3 = vor.u32 1.1754944e-38, %v522_v1  ;;  %vm521_vm15 = vcmp.eq.f32.partialorder %v520_v7, 8.507059e+37 }
 0xe3e   :  { %v772_v60 = vpop.eup %771 }
 0xe3f   :  { %v512_v61 = vmul.f32 %v772_v60, %v510_v59  ;;  %vm517_vm1 = vweird.f32 %v772_v60 }
 0xe40   :  { %vm518_vm14 = vmor %vm516_vm13, %vm517_vm1 }
 0xe41   :  { %v513_v62 = vsub.f32 1.0, %v512_v61 }
 0xe43   :  { %v514_v63 = vmul.f32 %v772_v60, %v513_v62 }
 0xe45   :  { %v515_v0 = vadd.f32 %v772_v60, %v514_v63 }
 0xe47   :  { %v519_v2 = vsel %vm518_vm14, %v772_v60, %v515_v0 }
 0xe48   :  { %v524_v5 = vsel %vm521_vm15, %v523_v3, %v519_v2 }
 0xe49   :  { %v530_v9 = vmul.f32 %v528_v8, %v524_v5 }
 0xea6   :  { %v533_v4 = vpop.permute.xlu0 %532 }
 0xea7   :  { %v535_v6 = vmul.f32 %v533_v4, %v524_v5 }
 0xea9   :  { %537 = vrot.lane.b32.xlu1 %v535_v6, %s817_s3 }
 0xf1b   :  { %v538_v10 = vpop.permute.xlu1 %537 }
 0xf1c   :  { %v540_v11 = vadd.f32 %v538_v10, %v530_v9 }
 0xf1e   :  { %773 = vtanh.f32 %v540_v11  ;;  %v597_v35 = vrot.slane %v540_v11, 4 }
 0xf24   :  { %v774_v12 = vpop.eup %773 }
 0xf25   :  { %543 = vrot.lane.b32.xlu2 %v774_v12, %s816_s27 }
 0xf7f   :  { %v544_v13 = vpop.permute.xlu2 %543 }
 0xf80   :  { %v546_v14 = vmul.f32 %v544_v13, %v524_v5 }
 0xf82   :  { %548 = vrot.lane.b32.xlu0 %v546_v14, %s817_s3 }
 0xff4   :  { %v549_v15 = vpop.permute.xlu0 %548 }
 0xff5   :  { %712 = vmatmul.msk.f32.vlgmr.msra.gmra.mxu2 %vm77_vm6, %v549_v15 }
0x1078   :  { %v569_v16 = vpop.f32.mrf.mxu2 }
0x1079   :  { %v573_v17 = vrot.slane %v569_v16, 4 }
0x107b   :  { %v575_v18 = vadd.f32 %v573_v17, %v75_v53 }
0x107d   :  { %775 = vtanh.f32 %v575_v18  ;;  %v713_v20 = vmul.f32 -1.442695, %v575_v18 }
0x107f   :  { %777 = vpow2.f32 %v713_v20 }
0x1083   :  { %v776_v19 = vpop.eup %775 }
0x1084   :  { %601 = vrot.lane.b32.xlu1 %v776_v19, %s816_s27 }
0x1085   :  { %v778_v21 = vpop.eup %777 }
0x1086   :  { %v579_v22 = vadd.f32 1.0, %v778_v21 }
0x1088   :  { %779 = vrcp.f32 %v579_v22  ;;  %v591_v28 = vand.u32 2147483648, %v579_v22  ;;  %vm585_vm6 = vweird.f32 %v579_v22  ;;  %v589_v29 = vand.u32 2147483647, %v579_v22 }
0x108a   :  { %v592_v31 = vor.u32 1.1754944e-38, %v591_v28  ;;  %vm590_vm3 = vcmp.eq.f32.partialorder %v589_v29, 8.507059e+37 }
0x108e   :  { %v780_v23 = vpop.eup %779 }
0x108f   :  { %v581_v24 = vmul.f32 %v780_v23, %v579_v22  ;;  %vm586_vm0 = vweird.f32 %v780_v23 }
0x1090   :  { %vm587_vm2 = vmor %vm585_vm6, %vm586_vm0 }
0x1091   :  { %v582_v25 = vsub.f32 1.0, %v581_v24 }
0x1093   :  { %v583_v26 = vmul.f32 %v780_v23, %v582_v25 }
0x1095   :  { %v584_v27 = vadd.f32 %v780_v23, %v583_v26 }
0x1097   :  { %v588_v30 = vsel %vm587_vm2, %v780_v23, %v584_v27 }
0x1098   :  { %v593_v33 = vsel %vm590_vm3, %v592_v31, %v588_v30 }
0x1099   :  { %v599_v36 = vmul.f32 %v597_v35, %v593_v33 }
0x10f6   :  { %v602_v32 = vpop.permute.xlu1 %601 }
0x10f7   :  { %v604_v34 = vmul.f32 %v602_v32, %v593_v33 }
0x10f9   :  { %606 = vrot.lane.b32.xlu2 %v604_v34, %s817_s3 }
0x1153   :  { %v607_v37 = vpop.permute.xlu2 %606 }
0x1154   :  { %v609_v38 = vadd.f32 %v607_v37, %v599_v36 }
0x1156   :  { %781 = vtanh.f32 %v609_v38 }
0x115c   :  { %v782_v39 = vpop.eup %781 }
0x115d   :  { %612 = vrot.lane.b32.xlu0 %v782_v39, %s816_s27 }
0x11cf   :  { %v613_v40 = vpop.permute.xlu0 %612 }
0x11d0   :  { %v615_v41 = vmul.f32 %v613_v40, %v593_v33 }
0x11d2   :  { %v616_v42 = vmul.f32 %v615_v41, %v615_v41 }
0x11d4   :  { %618 = vrot.lane.b32.xlu1 %v616_v42, %s817_s3 }
0x1246   :  { %v619_v43 = vpop.permute.xlu1 %618 }
0x1247   :  { %v626_v44 = vsel %vm625_vm4, %v619_v43, 0.0  ;;  %v622_v45 = vsel %vm621_vm5, %v619_v43, 0.0 }
0x1248   :  { %627 = vadd.xlane.f32.xlu2 %v626_v44  ;;  %623 = vadd.xlane.f32.xlu0 %v622_v45 }
0x12bb   :  { %v628_v46 = vpop.xlane.xlu2 %627  ;;  %v624_v47 = vpop.xlane.xlu0 %623 }
0x12bc   :  { %v641_v48 = vmax.f32 %v628_v46, 1e-24  ;;  %v629_v49 = vmax.f32 %v624_v47, 1e-24 }
0x12be   :  { %783 = vrsqrt.f32 %v641_v48  ;;  %vm648_vm9 = vweird.f32 %v641_v48  ;;  %vm636_vm11 = vweird.f32 %v629_v49 }
0x12bf   :  { %785 = vrsqrt.f32 %v629_v49 }
0x12c4   :  { %v784_v50 = vpop.eup %783 }
0x12c5   :  { %v786_v51 = vpop.eup %785  ;;  %v643_v52 = vmul.f32 %v784_v50, %v641_v48  ;;  %vm649_vm7 = vweird.f32 %v784_v50 }
0x12c6   :  { %v631_v53 = vmul.f32 %v786_v51, %v629_v49  ;;  %vm637_vm8 = vweird.f32 %v786_v51  ;;  %vm650_vm10 = vmor %vm648_vm9, %vm649_vm7 }
0x12c7   :  { %v644_v54 = vmul.f32 %v784_v50, %v643_v52  ;;  %vm638_vm12 = vmor %vm636_vm11, %vm637_vm8 }
0x12c8   :  { %v632_v55 = vmul.f32 %v786_v51, %v631_v53 }
0x12c9   :  { %v645_v56 = vmul.f32 0.5, %v644_v54 }
0x12ca   :  { %v633_v57 = vmul.f32 0.5, %v632_v55 }
0x12cb   :  { %v646_v58 = vsub.f32 1.5, %v645_v56 }
0x12cc   :  { %v634_v59 = vsub.f32 1.5, %v633_v57 }
0x12cd   :  { %v647_v60 = vmul.f32 %v784_v50, %v646_v58 }
0x12ce   :  { %v635_v61 = vmul.f32 %v786_v51, %v634_v59 }
0x12cf   :  { %v651_v62 = vsel %vm650_vm10, %v784_v50, %v647_v60 }
0x12d0   :  { %v639_v63 = vsel %vm638_vm12, %v786_v51, %v635_v61  ;;  %v652_v0 = vmul.f32 %v651_v62, %v615_v41 }
0x12d1   :  { %v640_v1 = vmul.f32 %v639_v63, %v615_v41 }
0x12d2   :  { %v654_v7 = vrot.slane %v652_v0, 2 }
0x12d4   :  { %v656_v2 = vsub.f32 %v640_v1, %v654_v7 }
0x12d6   :  { %v657_v3 = vmul.f32 %v656_v2, %v656_v2 }
0x12d8   :  { %659 = vrot.lane.b32.xlu1 %v657_v3, %s817_s3 }
0x134a   :  { %v660_v4 = vpop.permute.xlu1 %659 }
0x134b   :  { %v662_v5 = vsel %vm621_vm5, %v660_v4, 0.0 }
0x134c   :  { %663 = vadd.xlane.f32.xlu1 %v662_v5 }
0x13bf   :  { %v664_v6 = vpop.xlane.xlu1 %663 }
0x13c0   :  { %787 = vrsqrt.f32 %v664_v6  ;;  %vm672_vm1 = vcmp.eq.f32.partialorder %v664_v6, inf  ;;  %v675_v15 = vand.u32 2147483648, %v664_v6  ;;  %vm674_vm13 = vcmp.eq.f32.partialorder %v664_v6, 0.0 }
0x13c6   :  { %v788_v8 = vpop.eup %787 }
0x13c7   :  { %v666_v9 = vmul.f32 %v788_v8, %v664_v6 }
0x13c9   :  { %v667_v10 = vmul.f32 %v788_v8, %v666_v9 }
0x13cb   :  { %v668_v11 = vmul.f32 0.5, %v667_v10 }
0x13cd   :  { %v669_v12 = vsub.f32 1.5, %v668_v11 }
0x13cf   :  { %v670_v13 = vmul.f32 %v788_v8, %v669_v12 }
0x13d1   :  { %v671_v14 = vmul.f32 %v670_v13, %v664_v6 }
0x13d3   :  { %v673_v16 = vsel %vm672_vm1, %v664_v6, %v671_v14 }
0x13d4   :  { %v676_v17 = vsel %vm674_vm13, %v675_v15, %v673_v16 }
0x13d5   :  { %677 = vst [vmem:[#allocation2 - $0x4] sm:$0x30] %v676_v17 }
0x13d6   :  { %688 = dma.vmem_to_hbm [thread:$0]  %s684_s8, 32, %s686_s11, [#allocation3]  }
0x13d7   :  { %813 = dma.done.wait [#allocation3], 32  }
0x13d8   :  { %814 = vsyncadd [#allocation3], 4294967264 }
0x13d9   :  { %693 = vsyncpa [#allocation3], 1 }

</bundles_post_ra>
